<compile_context>
chip_gen: v7x
topology: tpu7x:2x2x1
jax: 0.10.0
libtpu: 0.0.40
codegen_flags: <defaults>
</compile_context>

<pallas_src>
import numpy as np

import jax
import jax.numpy as jnp
from jax.experimental import pallas as pl
from jax.experimental.pallas import tpu as pltpu

_LANES = 128
_PAD_SENTINEL = -1_000_000  # position id used for padded lanes


def _masked_tv_contrib(v, pos):
    """sqrt(d^2 + 0.01) for lane-neighbour differences of `v`, invalid pairs zeroed.

    v:   (R, L) float32, L a multiple of 128.  Real data occupies a prefix of
         the lanes; neighbouring positions along the difference axis sit in
         neighbouring lanes.
    pos: (1, L) int32 position ids: consecutive for genuine neighbours, a gap
         of >= 2 across channel seams, and a large sentinel on padded lanes.
    """
    L = v.shape[-1]
    # One XLU lane rotate pairs every lane with one of its +/-1 neighbours
    # (which of the two depends on the hardware rotate direction; the pos-based
    # mask below is exact either way and counts each valid pair exactly once).
    v_nbr = pltpu.roll(v, shift=L - 1, axis=1)
    p_nbr = pltpu.roll(pos, shift=L - 1, axis=1)

    d = v_nbr - v
    c = jnp.sqrt(d * d + 0.01)

    # Mask AFTER the sqrt: sqrt(0 + 0.01) = 0.1 must not leak in from wrapped,
    # padded or cross-channel positions.
    valid = jnp.abs(p_nbr - pos) == 1            # (1, L), broadcasts over rows
    return jnp.where(valid, c, 0.0)


def _tv_kernel(vw_ref, pw_ref, vh_ref, ph_ref, o_ref):
    # Upcast exactly once.
    cw = _masked_tv_contrib(vw_ref[...].astype(jnp.float32), pw_ref[...])
    ch = _masked_tv_contrib(vh_ref[...].astype(jnp.float32), ph_ref[...])

    # Cheap sublane reduction first (VPU adds, keepdims keeps a lane row) ...
    rw = jnp.sum(cw, axis=0, keepdims=True)      # (1, Lw)
    rh = jnp.sum(ch, axis=0, keepdims=True)      # (1, Lh)

    if rw.shape == rh.shape:
        # ... then a single cross-lane (XLU) reduce shared by both TV terms.
        o_ref[0, 0] = jnp.sum(rw + rh)
    else:
        o_ref[0, 0] = jnp.sum(rw) + jnp.sum(rh)


def _pad_lanes(a2d):
    """Pad the last (lane) dim of a 2-D array up to a multiple of 128."""
    r, c = a2d.shape
    padded = ((c + _LANES - 1) // _LANES) * _LANES
    if padded == c:
        return a2d
    return jnp.pad(a2d, ((0, 0), (0, padded - c)))


def _position_row(n_groups, group_size, padded_len):
    """(1, padded_len) int32 position ids for the lane axis.

    Within a group (= one channel) ids are consecutive (diff 1 for genuine
    neighbours); across groups the id jumps by 2 (channel seam, never a valid
    pair); padded lanes get a large sentinel.
    """
    ids = (np.arange(n_groups, dtype=np.int32)[:, None] * (group_size + 1)
           + np.arange(group_size, dtype=np.int32)[None, :]).reshape(-1)
    row = np.full((padded_len,), _PAD_SENTINEL, dtype=np.int32)
    row[: ids.shape[0]] = ids
    return jnp.asarray(row.reshape(1, padded_len))


def total_variation(adv_patch: jax.Array) -> jax.Array:
    """Total variation of a (C, H, W) patch, matching the PyTorch module."""
    assert adv_patch.ndim == 3, "expected a (C, H, W) patch"
    C, H, W = adv_patch.shape

    # Width-difference view: lanes index (c, w), sublanes index h.
    view_w = jnp.transpose(adv_patch, (1, 0, 2)).reshape(H, C * W)
    view_w = _pad_lanes(view_w)
    pos_w = _position_row(C, W, view_w.shape[1])

    # Height-difference view: lanes index (c, h), sublanes index w.
    view_h = jnp.transpose(adv_patch, (2, 0, 1)).reshape(W, C * H)
    view_h = _pad_lanes(view_h)
    pos_h = _position_row(C, H, view_h.shape[1])

    n_el = C * H * W
    bytes_in = (view_w.size + view_h.size) * adv_patch.dtype.itemsize \
        + (pos_w.size + pos_h.size) * 4
    cost = pl.CostEstimate(
        flops=12 * n_el,              # diffs, squares, adds, mask/select
        transcendentals=2 * n_el,     # two sqrt fields
        bytes_accessed=bytes_in + 4,  # inputs + scalar output
    )

    out = pl.pallas_call(
        _tv_kernel,
        out_shape=jax.ShapeDtypeStruct((1, 1), jnp.float32),
        in_specs=[pl.BlockSpec(memory_space=pltpu.VMEM) for _ in range(4)],
        out_specs=pl.BlockSpec(memory_space=pltpu.SMEM),
        cost_estimate=cost,
    )(view_w, pos_w, view_h, pos_h)
    return out[0, 0]


def _reference_tv(adv_patch: jax.Array) -> jax.Array:
    x = adv_patch.astype(jnp.float32)
    t1 = jnp.sum(jnp.sqrt((x[:, :, 1:] - x[:, :, :-1]) ** 2 + 0.01))
    t2 = jnp.sum(jnp.sqrt((x[:, 1:, :] - x[:, :-1, :]) ** 2 + 0.01))
    return t1 + t2


if __name__ == "__main__":
    key = jax.random.PRNGKey(0)
    # Adversarial patch: 3 channels, 16x16 spatial, values in [0, 1].
    adv_patch = jax.random.uniform(key, (3, 16, 16), dtype=jnp.float32)

    tv = total_variation(adv_patch)
    jax.block_until_ready(tv)

    ref = _reference_tv(adv_patch)
    assert jnp.allclose(tv, ref, rtol=1e-5, atol=1e-4), (tv, ref)

    print("KERNEL_OK")
</pallas_src>

<mosaic_0001>
module attributes {stable_mosaic.version = 11 : i64} {
  func.func @_tv_kernel(%arg0: memref<16x128xf32, #tpu.memory_space<vmem>>, %arg1: memref<1x128xi32, #tpu.memory_space<vmem>>, %arg2: memref<16x128xf32, #tpu.memory_space<vmem>>, %arg3: memref<1x128xi32, #tpu.memory_space<vmem>>, %arg4: memref<1x1xf32, #tpu.memory_space<smem>>) attributes {dimension_semantics = [], scalar_prefetch = 0 : i64, scratch_operands = 0 : i64, tpu.core_type = #tpu.core_type<tc>} {
    %c0 = arith.constant 0 : index
    %c0_0 = arith.constant 0 : index
    %0 = vector.load %arg0[%c0, %c0_0] : memref<16x128xf32, #tpu.memory_space<vmem>>, vector<16x128xf32>
    %c0_1 = arith.constant 0 : index
    %c0_2 = arith.constant 0 : index
    %1 = vector.load %arg1[%c0_1, %c0_2] : memref<1x128xi32, #tpu.memory_space<vmem>>, vector<1x128xi32>
    %c127_i32 = arith.constant 127 : i32
    %2 = tpu.dynamic_rotate %0 by %c127_i32 dim 1 : vector<16x128xf32>, i32 -> vector<16x128xf32>
    %c127_i32_3 = arith.constant 127 : i32
    %3 = tpu.dynamic_rotate %1 by %c127_i32_3 dim 1 : vector<1x128xi32>, i32 -> vector<1x128xi32>
    %4 = arith.subf %2, %0 : vector<16x128xf32>
    %5 = arith.mulf %4, %4 : vector<16x128xf32>
    %cst = arith.constant 0.00999999977 : f32
    %6 = vector.broadcast %cst : f32 to vector<16x128xf32>
    %7 = arith.addf %5, %6 : vector<16x128xf32>
    %8 = math.sqrt %7 : vector<16x128xf32>
    %9 = arith.subi %3, %1 : vector<1x128xi32>
    %10 = math.absi %9 : vector<1x128xi32>
    %c1_i32 = arith.constant 1 : i32
    %11 = vector.broadcast %c1_i32 : i32 to vector<1x128xi32>
    %12 = arith.cmpi eq, %10, %11 : vector<1x128xi32>
    %cst_4 = arith.constant 0.000000e+00 : f32
    %13 = vector.shape_cast %12 : vector<1x128xi1> to vector<1x128xi1>
    %14 = vector.broadcast %13 : vector<1x128xi1> to vector<16x128xi1>
    %15 = vector.broadcast %cst_4 : f32 to vector<16x128xf32>
    %16 = arith.select %14, %8, %15 : vector<16x128xi1>, vector<16x128xf32>
    %c0_5 = arith.constant 0 : index
    %c0_6 = arith.constant 0 : index
    %17 = vector.load %arg2[%c0_5, %c0_6] : memref<16x128xf32, #tpu.memory_space<vmem>>, vector<16x128xf32>
    %c0_7 = arith.constant 0 : index
    %c0_8 = arith.constant 0 : index
    %18 = vector.load %arg3[%c0_7, %c0_8] : memref<1x128xi32, #tpu.memory_space<vmem>>, vector<1x128xi32>
    %c127_i32_9 = arith.constant 127 : i32
    %19 = tpu.dynamic_rotate %17 by %c127_i32_9 dim 1 : vector<16x128xf32>, i32 -> vector<16x128xf32>
    %c127_i32_10 = arith.constant 127 : i32
    %20 = tpu.dynamic_rotate %18 by %c127_i32_10 dim 1 : vector<1x128xi32>, i32 -> vector<1x128xi32>
    %21 = arith.subf %19, %17 : vector<16x128xf32>
    %22 = arith.mulf %21, %21 : vector<16x128xf32>
    %cst_11 = arith.constant 0.00999999977 : f32
    %23 = vector.broadcast %cst_11 : f32 to vector<16x128xf32>
    %24 = arith.addf %22, %23 : vector<16x128xf32>
    %25 = math.sqrt %24 : vector<16x128xf32>
    %26 = arith.subi %20, %18 : vector<1x128xi32>
    %27 = math.absi %26 : vector<1x128xi32>
    %c1_i32_12 = arith.constant 1 : i32
    %28 = vector.broadcast %c1_i32_12 : i32 to vector<1x128xi32>
    %29 = arith.cmpi eq, %27, %28 : vector<1x128xi32>
    %cst_13 = arith.constant 0.000000e+00 : f32
    %30 = vector.shape_cast %29 : vector<1x128xi1> to vector<1x128xi1>
    %31 = vector.broadcast %30 : vector<1x128xi1> to vector<16x128xi1>
    %32 = vector.broadcast %cst_13 : f32 to vector<16x128xf32>
    %33 = arith.select %31, %25, %32 : vector<16x128xi1>, vector<16x128xf32>
    %cst_14 = arith.constant dense<0.000000e+00> : vector<128xf32>
    %34 = vector.multi_reduction <add>, %16, %cst_14 [0] : vector<16x128xf32> to vector<128xf32>
    %35 = vector.shape_cast %34 : vector<128xf32> to vector<1x128xf32>
    %cst_15 = arith.constant dense<0.000000e+00> : vector<128xf32>
    %36 = vector.multi_reduction <add>, %33, %cst_15 [0] : vector<16x128xf32> to vector<128xf32>
    %37 = vector.shape_cast %36 : vector<128xf32> to vector<1x128xf32>
    %38 = arith.addf %35, %37 : vector<1x128xf32>
    %39 = vector.shape_cast %38 : vector<1x128xf32> to vector<1x1x128xf32>
    %cst_16 = arith.constant dense<0.000000e+00> : vector<1xf32>
    %40 = vector.multi_reduction <add>, %39, %cst_16 [1, 2] : vector<1x1x128xf32> to vector<1xf32>
    %41 = vector.shape_cast %40 : vector<1xf32> to vector<1x1x1xf32>
    %42 = vector.extract %41[0, 0, 0] : f32 from vector<1x1x1xf32>
    %c0_17 = arith.constant 0 : index
    %c0_18 = arith.constant 0 : index
    %43 = memref.load %arg4[%c0_17, %c0_18] : memref<1x1xf32, #tpu.memory_space<smem>>
    memref.store %42, %arg4[%c0_17, %c0_18] : memref<1x1xf32, #tpu.memory_space<smem>>
    return
  }
}

</mosaic_0001>

<bundles_post_ra>
// kernel: tpu_custom_call.1
= control target key start
LH: loop header
LB: loop body
LE: loop exit
PB: predicated region body
PF: predicated region fallthrough
CT: control target
= control target key end

     0   :  { %9 = vsyncpa [#allocation3], 0  ;;  %s326_s0 = inlined_call_operand.hbm [shape: f32[16,128], index: 0, kind: input, shape index: {}]   ;;  %s327_s1 = inlined_call_operand.vmem [shape: s32[1,128], index: 1, kind: input, shape index: {}]   ;;  %s328_s2 = inlined_call_operand.hbm [shape: f32[16,128], index: 2, kind: input, shape index: {}]   ;;  %s329_s3 = inlined_call_operand.vmem [shape: s32[1,128], index: 3, kind: input, shape index: {}]   ;;  %s330_s4 = inlined_call_operand.hbm [shape: f32[1,1], index: 4, kind: output, shape index: {}]  }
   0x1   :  { %10 = vsyncpa [#allocation6], 0 }
   0x2   :  { %11 = vsyncpa [#allocation4], 0  ;;  %s252_s15 = smov [#allocation2]   ;;  %s192_s19 = scalar_lea.hbm %s326_s0, 256 }
   0x3   :  { %s17_s16 = sshll.u32 %s252_s15, 4  ;;  %p193_p0 = scmp.ne.s32.totalorder %s326_s0, %s192_s19  ;;  %s18_s16 = int_to_ptr.vmem [resolvable:$true] %s17_s16 }
   0x4   :  { %p196_p1 = scmp.lt.u32.totalorder %s192_s19, %s326_s0 }
   0x6   :  { %p198_p2 = pnand %p196_p1, %p193_p0 }
   0x8   :  { %201 = shalt.err (!%p198_p2)
}
   0x9   :  { %s202_s24 = scalar_lea.vmem %s18_s16, 256  ;;  %p207_p4 = scmp.lt.s32.totalorder %s18_s16, %s18_s16 }
   0xa   :  { %p203_p3 = scmp.ne.s32.totalorder %s18_s16, %s202_s24  ;;  %p208_p5 = scmp.lt.s32.totalorder %s202_s24, %s202_s24 }
   0xc   :  { %p209_p6 = por %p208_p5, %p207_p4 }
   0xe   :  { %p210_p7 = pnand %p209_p6, %p203_p3 }
  0x10   :  { %213 = shalt.err (!%p210_p7)
}
  0x11   :  { %s253_s25 = smov 128   ;;  %s254_s26 = smov 8  }
  0x12   :  { %23 = dma.hbm_to_vmem [thread:$0]  %s326_s0, 256, %s18_s16, [#allocation3], %s253_s25, %s253_s25, %s254_s26  }
  0x13   :  { %s255_s29 = smov [#allocation5]   ;;  %s214_s7 = scalar_lea.hbm %s328_s2, 256 }
  0x14   :  { %s31_s30 = sshll.u32 %s255_s29, 4  ;;  %p215_p8 = scmp.ne.s32.totalorder %s328_s2, %s214_s7  ;;  %s32_s30 = int_to_ptr.vmem [resolvable:$true] %s31_s30 }
  0x15   :  { %p218_p9 = scmp.lt.u32.totalorder %s214_s7, %s328_s2 }
  0x17   :  { %p220_p10 = pnand %p218_p9, %p215_p8 }
  0x19   :  { %223 = shalt.err (!%p220_p10)
}
  0x1a   :  { %s224_s12 = scalar_lea.vmem %s32_s30, 256  ;;  %p229_p12 = scmp.lt.s32.totalorder %s32_s30, %s32_s30 }
  0x1b   :  { %p225_p11 = scmp.ne.s32.totalorder %s32_s30, %s224_s12  ;;  %p230_p13 = scmp.lt.s32.totalorder %s224_s12, %s224_s12 }
  0x1d   :  { %p231_p0 = por %p230_p13, %p229_p12 }
  0x1f   :  { %p232_p1 = pnand %p231_p0, %p225_p11 }
  0x21   :  { %235 = shalt.err (!%p232_p1)
}
  0x22   :  { %37 = dma.hbm_to_vmem [thread:$0]  %s328_s2, 256, %s32_s30, [#allocation6], %s253_s25, %s253_s25, %s254_s26  }
  0x23   :  { %246 = dma.done.wait [#allocation3], 256  }
  0x24   :  { %247 = vsyncadd [#allocation3], 4294967040 }
  0x25   :  { %248 = dma.done.wait [#allocation6], 256  }
  0x26   :  { %249 = vsyncadd [#allocation6], 4294967040  ;;  %v88_v0 = vld [vmem:[#allocation5] sm:$0xff]  ;;  %v46_v1 = vld [vmem:[#allocation2] sm:$0xff]  ;;  %s256_s14 = smov 127   ;;  %v81_v20 = vlaneseq  ;;  %v257_v34 = vmov 0  }
  0x27   :  { %91 = vrot.lane.b32.xlu1 %v88_v0, %s256_s14  ;;  %49 = vrot.lane.b32.xlu0 %v46_v1, %s256_s14  ;;  %v89_v2 = vld [vmem:[#allocation5 + $0x8] sm:$0xff]  ;;  %v47_v3 = vld [vmem:[#allocation2 + $0x8] sm:$0xff]  ;;  %v90_v4 = vld [vmem:[%s329_s3] sm:$0x1]  ;;  %vm145_vm12 = vcmask 1040384   ;;  %s236_s19 = scalar_lea.hbm %s330_s4, 16 }
  0x28   :  { %v48_v5 = vld [vmem:[%s327_s1] sm:$0x1]  ;;  %v82_v27 = vshrl.u32 %v81_v20, 7  ;;  %p237_p2 = scmp.ne.s32.totalorder %s330_s4, %s236_s19  ;;  %p240_p3 = scmp.lt.u32.totalorder %s236_s19, %s330_s4 }
  0x2a   :  { %v83_v31 = vsub.s32 0, %v82_v27  ;;  %p242_p4 = pnand %p240_p3, %p237_p2 }
  0x2b   :  { %93 = vrot.lane.b32.xlu1 %v89_v2, %s256_s14  ;;  %51 = vrot.lane.b32.xlu0 %v47_v3, %s256_s14 }
  0x2f   :  { %95 = vrot.lane.b32.xlu1 %v90_v4, %s256_s14  ;;  %53 = vrot.lane.b32.xlu0 %v48_v5, %s256_s14 }
  0x99   :  { %v92_v6 = vpop.permute.xlu1 %91  ;;  %v50_v7 = vpop.permute.xlu0 %49 }
  0x9a   :  { %v97_v8 = vsub.f32 %v92_v6, %v88_v0  ;;  %v55_v9 = vsub.f32 %v50_v7, %v46_v1 }
  0x9c   :  { %v99_v10 = vmul.f32 %v97_v8, %v97_v8  ;;  %v57_v11 = vmul.f32 %v55_v9, %v55_v9 }
  0x9d   :  { %v94_v12 = vpop.permute.xlu1 %93  ;;  %v52_v13 = vpop.permute.xlu0 %51 }
  0x9e   :  { %v101_v14 = vadd.f32 0.01, %v99_v10  ;;  %v59_v15 = vadd.f32 0.01, %v57_v11  ;;  %v98_v16 = vsub.f32 %v94_v12, %v89_v2  ;;  %v56_v17 = vsub.f32 %v52_v13, %v47_v3 }
  0xa0   :  { %184 = vrsqrt.f32 %v101_v14  ;;  %v100_v18 = vmul.f32 %v98_v16, %v98_v16  ;;  %v58_v19 = vmul.f32 %v56_v17, %v56_v17  ;;  %vm105_vm2 = vcmp.eq.f32.partialorder %v101_v14, inf }
  0xa1   :  { %186 = vrsqrt.f32 %v59_v15  ;;  %v96_v21 = vpop.permute.xlu1 %95  ;;  %v54_v22 = vpop.permute.xlu0 %53  ;;  %vm107_vm3 = vcmp.eq.f32.partialorder %v101_v14, 0.0  ;;  %vm63_vm4 = vcmp.eq.f32.partialorder %v59_v15, inf  ;;  %v108_v44 = vand.u32 2147483648, %v101_v14 }
  0xa2   :  { %v102_v23 = vadd.f32 0.01, %v100_v18  ;;  %v60_v24 = vadd.f32 0.01, %v58_v19  ;;  %v117_v25 = vsub.s32 %v96_v21, %v90_v4  ;;  %v75_v26 = vsub.s32 %v54_v22, %v48_v5 }
  0xa3   :  { %vm65_vm5 = vcmp.eq.f32.partialorder %v59_v15, 0.0  ;;  %v66_v46 = vand.u32 2147483648, %v59_v15 }
  0xa4   :  { %188 = vrsqrt.f32 %v102_v23  ;;  %v119_v28 = vsub.s32 0, %v117_v25  ;;  %v77_v29 = vsub.s32 0, %v75_v26  ;;  %vm112_vm6 = vcmp.eq.f32.partialorder %v102_v23, inf }
  0xa5   :  { %190 = vrsqrt.f32 %v60_v24  ;;  %vm114_vm7 = vcmp.eq.f32.partialorder %v102_v23, 0.0  ;;  %v115_v49 = vand.u32 2147483648, %v102_v23  ;;  %vm70_vm9 = vcmp.eq.f32.partialorder %v60_v24, inf }
  0xa6   :  { %v174_v30 = vmin.u32 %v119_v28, %v117_v25  ;;  %v173_v32 = vmin.u32 %v77_v29, %v75_v26  ;;  %v73_v54 = vand.u32 2147483648, %v60_v24  ;;  %vm72_vm11 = vcmp.eq.f32.partialorder %v60_v24, 0.0 }
  0xa8   :  { %vm121_vm0 = vcmp.eq.s32.totalorder %v174_v30, 1  ;;  %vm79_vm1 = vcmp.eq.s32.totalorder %v173_v32, 1 }
  0xa9   :  { %v122_v35 = vsel %vm121_vm0, 1, %v257_v34  ;;  %v80_v38 = vsel %vm79_vm1, 1, %v257_v34 }
  0xaa   :  { %v185_v33 = vpop.eup %184  ;;  %v126_v39 = vrot.slane %v122_v35, %v83_v31  ;;  %v84_v42 = vrot.slane %v80_v38, %v83_v31 }
  0xab   :  { %v187_v36 = vpop.eup %186  ;;  %v104_v37 = vmul.f32 %v185_v33, %v101_v14 }
  0xac   :  { %v62_v40 = vmul.f32 %v187_v36, %v59_v15  ;;  %vm127_vm8 = vcmp.eq.s32.totalorder %v126_v39, 1  ;;  %vm85_vm10 = vcmp.eq.s32.totalorder %v84_v42, 1 }
  0xad   :  { %v106_v41 = vsel %vm105_vm2, %v101_v14, %v104_v37 }
  0xae   :  { %v189_v43 = vpop.eup %188  ;;  %v64_v45 = vsel %vm63_vm4, %v59_v15, %v62_v40  ;;  %v109_v50 = vsel %vm107_vm3, %v108_v44, %v106_v41 }
  0xaf   :  { %v191_v47 = vpop.eup %190  ;;  %v111_v48 = vmul.f32 %v189_v43, %v102_v23  ;;  %v67_v53 = vsel %vm65_vm5, %v66_v46, %v64_v45  ;;  %v128_v57 = vsel %vm127_vm8, %v109_v50, 0.0 }
  0xb0   :  { %v69_v51 = vmul.f32 %v191_v47, %v60_v24  ;;  %v86_v61 = vsel %vm85_vm10, %v67_v53, 0.0 }
  0xb1   :  { %v113_v52 = vsel %vm112_vm6, %v102_v23, %v111_v48 }
  0xb2   :  { %v116_v55 = vsel %vm114_vm7, %v115_v49, %v113_v52  ;;  %v71_v56 = vsel %vm70_vm9, %v60_v24, %v69_v51 }
  0xb3   :  { %v129_v58 = vsel %vm127_vm8, %v116_v55, 0.0  ;;  %v74_v59 = vsel %vm72_vm11, %v73_v54, %v71_v56 }
  0xb4   :  { %v137_v60 = vadd.f32 %v129_v58, %v128_v57  ;;  %v87_v62 = vsel %vm85_vm10, %v74_v59, 0.0 }
  0xb5   :  { %v130_v63 = vadd.f32 %v87_v62, %v86_v61 }
  0xb6   :  { %v138_v0 = vrot.slane %v137_v60, 4 }
  0xb7   :  { %v131_v1 = vrot.slane %v130_v63, 4 }
  0xb8   :  { %v139_v2 = vadd.f32 %v138_v0, %v137_v60 }
  0xb9   :  { %v132_v3 = vadd.f32 %v131_v1, %v130_v63 }
  0xba   :  { %v140_v4 = vrot.slane %v139_v2, 2 }
  0xbb   :  { %v133_v5 = vrot.slane %v132_v3, 2 }
  0xbc   :  { %v141_v6 = vadd.f32 %v140_v4, %v139_v2 }
  0xbd   :  { %v134_v7 = vadd.f32 %v133_v5, %v132_v3 }
  0xbe   :  { %v142_v8 = vrot.slane %v141_v6, 1 }
  0xbf   :  { %v135_v9 = vrot.slane %v134_v7, 1 }
  0xc0   :  { %v143_v10 = vadd.f32 %v142_v8, %v141_v6 }
  0xc1   :  { %v136_v11 = vadd.f32 %v135_v9, %v134_v7 }
  0xc3   :  { %v144_v12 = vadd.f32 %v143_v10, %v136_v11 }
  0xc5   :  { %v146_v13 = vsel %vm145_vm12, %v144_v12, 0.0 }
  0xc6   :  { %147 = vadd.xlane.f32.xlu0 %v146_v13 }
 0x153   :  { %v148_v14 = vpop.xlane.xlu0 %147 }
 0x154   :  { %v149_v15 = vrot.slane %v148_v14, 4 }
 0x156   :  { %v150_v16 = vadd.f32 %v149_v15, %v148_v14 }
 0x158   :  { %v151_v17 = vrot.slane %v150_v16, 2 }
 0x15a   :  { %v152_v18 = vadd.f32 %v151_v17, %v150_v16 }
 0x15c   :  { %v153_v19 = vrot.slane %v152_v18, 1 }
 0x15e   :  { %v154_v20 = vadd.f32 %v153_v19, %v152_v18 }
 0x160   :  { %175 = vpush %v154_v20 }
 0x191   :  { %s176_s1 = spop %175 }
 0x192   :  { %157 = sst [smem:[#allocation7]] %s176_s1 }
 0x193   :  { %245 = shalt.err (!%p242_p4)
}
 0x194   :  { %s258_s24 = smov [#allocation7]  }
 0x195   :  { %165 = dma.smem_to_hbm %s258_s24, 16, %s330_s4, [#allocation4]  }
 0x196   :  { %250 = dma.done.wait [#allocation4], 16  }
 0x197   :  { %251 = vsyncadd [#allocation4], 4294967280 }
 0x198   :  { %169 = sfence }
 0x199   :  { %170 = vsyncpa [#allocation3], 1 }
 0x19a   :  { %171 = vsyncpa [#allocation6], 1 }
 0x19b   :  { %172 = vsyncpa [#allocation4], 1 }

</bundles_post_ra>
